<compile_context>
chip_gen: v7x
topology: tpu7x:2x2x1
jax: 0.10.0
libtpu: 0.0.40
codegen_flags: <defaults>
</compile_context>

<pallas_src>
import functools

import jax
import jax.numpy as jnp
from jax.experimental import pallas as pl
from jax.experimental.pallas import tpu as pltpu

BN_EPS = 1e-5


def _round_up(x, m):
    return (x + m - 1) // m * m


def _default_num_cores():
    # v7x has 2 TensorCores per chip; split the node stream across them.
    try:
        kind = jax.devices()[0].device_kind.lower()
        return 2 if "v7" in kind else 1
    except Exception:
        return 1


def _weight_and_sum_kernel(
    feats_ref,            # (TILE_N, F)   node features, natural layout (f32/bf16)
    side_ref,             # (2, TILE_N)   f32: row 0 = smask, row 1 = graph id
    waw_ref, baw_ref,     # (F, 1), (1, 1) f32  atom-weighting Linear
    hgp_ref,              # out (1, B_pad, F) f32  per-core partial readout
    weight_ref,           # out (1, TILE_N)   f32  lane-dense atom weights
    hg_acc,               # scratch (B_pad, F) f32
    *, n_nodes, tiles_per_core, tile_n,
):
    c = pl.program_id(0)                  # core split (parallel axis)
    t = pl.program_id(1)                  # node tiles handled by this core

    @pl.when(t == 0)
    def _init():
        hg_acc[...] = jnp.zeros_like(hg_acc)

    x_raw = feats_ref[...]                               # (T, F)
    T, F = x_raw.shape
    B_pad = hg_acc.shape[0]
    dtype = x_raw.dtype

    # Ragged tail / fully-empty tiles: rows beyond N are unspecified -> mask.
    start = (c * tiles_per_core + t) * tile_n
    valid_col = (start + jax.lax.broadcasted_iota(jnp.int32, (T, 1), 0)) < n_nodes
    x = jnp.where(valid_col, x_raw, jnp.zeros_like(x_raw))

    # In-kernel transpose (XLU slot is idle in this HBM-bound kernel); done in
    # f32 so the atom-weighting logit stays accurate for bf16 feats streams.
    xt32 = x.astype(jnp.float32).T                       # (F, T)

    smask_row = side_ref[0:1, :]                         # (1, T) f32
    seg_row = side_ref[1:2, :].astype(jnp.int32)         # (1, T) graph ids

    # WeightAndSum.atom_weighting: sigmoid(x @ w_aw + b) * smask, lane-major.
    logit = jnp.sum(xt32 * waw_ref[...], axis=0, keepdims=True) + baw_ref[...]
    valid_row = (start + jax.lax.broadcasted_iota(jnp.int32, (1, T), 1)) < n_nodes
    weight = jnp.where(valid_row, jax.nn.sigmoid(logit) * smask_row, 0.0)
    weight_ref[...] = weight                             # lane-dense store

    # Weighted per-graph segment-sum: one-hot over graphs, NT matmul on MXU.
    onehot = (jax.lax.broadcasted_iota(jnp.int32, (B_pad, T), 0) == seg_row)
    rhs = xt32.astype(dtype)
    if B_pad > F:
        # Fold the atom weight into the smaller operand (F*T ops vs B*T ops).
        lhs = onehot.astype(dtype)
        rhs = rhs * weight.astype(dtype)
    else:
        lhs = onehot.astype(dtype) * weight.astype(dtype)
    hg_acc[...] += jax.lax.dot_general(
        lhs, rhs, dimension_numbers=(((1,), (1,)), ((), ())),
        preferred_element_type=jnp.float32)

    # Write-once accumulator flush (documented revisited-block pattern).
    @pl.when(t == pl.num_programs(1) - 1)
    def _flush():
        hgp_ref[0] = hg_acc[...]


def _mlp_head_kernel(hgp_ref, w1, b1, w2, b2, w3, b3, wp, bp, out_ref):
    # Combine per-core partial readouts, then Linear+ReLU chain (eval-mode
    # BatchNorm folded into the next Linear) and the final prediction Linear.
    h = jnp.sum(hgp_ref[...], axis=0)                    # (B_pad, F) f32
    h = jnp.maximum(jnp.dot(h, w1[...], preferred_element_type=jnp.float32)
                    + b1[...], 0.0)
    h = jnp.maximum(jnp.dot(h, w2[...], preferred_element_type=jnp.float32)
                    + b2[...], 0.0)
    h = jnp.maximum(jnp.dot(h, w3[...], preferred_element_type=jnp.float32)
                    + b3[...], 0.0)
    out_ref[...] = (jnp.dot(h, wp[...], preferred_element_type=jnp.float32)
                    + bp[...])


def _fold_bn_into_next_linear(bn, w_next, b_next):
    """Eval-mode BatchNorm1d(y) followed by Linear(w,b) == Linear(w', b')."""
    gamma, beta, mean, var = bn[0], bn[1], bn[2], bn[3]
    scale = gamma * jax.lax.rsqrt(var + BN_EPS)          # (H,)
    shift = beta - mean * scale                          # (H,)
    w_f = scale[:, None] * w_next
    b_f = b_next + shift[None, :] @ w_next
    return w_f.astype(jnp.float32), b_f.astype(jnp.float32)


def base_gnn_forward(node_feats, smask, seg_ids, num_graphs, params, *,
                     tile_n=16384, num_cores=None):
    """node_feats: (N, F) f32/bf16; smask: (N, 1); seg_ids: (N,) graph ids.

    Returns (out (B, 1) f32, weight (N, 1) f32), matching BaseGNN.forward in
    eval mode.  Passing bf16 node_feats halves the dominant HBM stream (MXU
    operands in bf16; accumulation and the MLP head stay f32).
    """
    N, F = node_feats.shape
    B = int(num_graphs)
    if num_cores is None:
        num_cores = _default_num_cores()
    num_cores = max(1, int(num_cores))

    # Fold eval-mode BatchNorm1d into the following Linear (exact in eval).
    w1 = params["w1"].astype(jnp.float32)
    b1 = params["b1"].astype(jnp.float32)
    w2f, b2f = _fold_bn_into_next_linear(params["bn1"], params["w2"], params["b2"])
    w3f, b3f = _fold_bn_into_next_linear(params["bn2"], params["w3"], params["b3"])
    wpf, bpf = _fold_bn_into_next_linear(params["bn3"], params["wp"], params["bp"])

    B_pad = _round_up(max(B, 1), 8)       # sublane-clean one-hot / accumulator

    # Node tiling: natural (N, F) feats blocks, no wrapper-side transpose/pad
    # of the dominant tensor.  Ragged tail is masked in-kernel; fully-empty
    # tiles (multi-core split of a small N) get their index clamped.
    tile_n = max(128, min(_round_up(int(tile_n), 128), _round_up(N, 128)))
    n_valid_tiles = pl.cdiv(N, tile_n)
    tiles_per_core = pl.cdiv(n_valid_tiles, num_cores)
    n_tiles = num_cores * tiles_per_core
    n_pad = n_tiles * tile_n

    # Tiny lane-major side stream: row 0 = smask (pad 0), row 1 = graph id as
    # f32 (exact for ids < 2^24; pad B_pad -> matches no one-hot row).
    side = jnp.full((2, n_pad), float(B_pad), jnp.float32)
    side = side.at[0, :].set(0.0)
    side = side.at[0, :N].set(smask.astype(jnp.float32).reshape(N))
    side = side.at[1, :N].set(seg_ids.astype(jnp.float32).reshape(N))

    def feats_map(c, t):
        idx = c * tiles_per_core + t
        return (jnp.minimum(idx, n_valid_tiles - 1), 0)   # clamp empty tiles

    def lane_map(c, t):
        return (0, c * tiles_per_core + t)

    in_specs = [
        pl.BlockSpec((tile_n, F), feats_map),
        pl.BlockSpec((2, tile_n), lane_map),
        pl.BlockSpec((F, 1), lambda c, t: (0, 0)),
        pl.BlockSpec((1, 1), lambda c, t: (0, 0)),
    ]
    out_specs = (
        pl.BlockSpec((1, B_pad, F), lambda c, t: (c, 0, 0)),  # per-core partial
        pl.BlockSpec((1, tile_n), lane_map),                  # lane-dense weight
    )
    out_shapes = (
        jax.ShapeDtypeStruct((num_cores, B_pad, F), jnp.float32),
        jax.ShapeDtypeStruct((1, n_pad), jnp.float32),
    )

    itemsize = jnp.dtype(node_feats.dtype).itemsize
    # Double-buffered feats block (lane-padded to 128) + headroom; cap at
    # 48 MiB so the same tile size also fits v7x's 64 MiB VMEM.
    feats_buf = tile_n * _round_up(F, 128) * itemsize
    vmem_limit = int(min(48 * 2**20, max(32 * 2**20, 2 * feats_buf + 20 * 2**20)))

    flops = int(2 * B_pad * F * n_pad       # segment-sum matmul
                + 4 * F * n_pad             # logit multiply/reduce + mask/cast
                + 4 * B_pad * n_pad)        # one-hot build / scale
    bytes_accessed = int(N * F * itemsize               # feats stream (1 pass)
                         + 2 * n_pad * 4                # smask/seg side stream
                         + n_pad * 4                    # lane-dense weight out
                         + num_cores * B_pad * F * 4    # partial readouts
                         + (F + 2) * 4)                 # atom-weighting params

    hg_partial, weight_row = pl.pallas_call(
        functools.partial(_weight_and_sum_kernel, n_nodes=N,
                          tiles_per_core=tiles_per_core, tile_n=tile_n),
        out_shape=out_shapes,
        grid=(num_cores, tiles_per_core),
        in_specs=in_specs,
        out_specs=out_specs,
        scratch_shapes=[pltpu.VMEM((B_pad, F), jnp.float32)],
        compiler_params=pltpu.CompilerParams(
            dimension_semantics=("parallel", "arbitrary"),
            vmem_limit_bytes=vmem_limit),
        cost_estimate=pl.CostEstimate(
            flops=flops, transcendentals=int(n_pad),
            bytes_accessed=bytes_accessed),
    )(node_feats, side,
      params["w_aw"].astype(jnp.float32), params["b_aw"].astype(jnp.float32))

    # Tiny epilogue kernel: cross-core combine + BN-folded MLP head + predict.
    head_inputs = (hg_partial, w1, b1, w2f, b2f, w3f, b3f, wpf, bpf)

    def _full_spec(arr):
        if arr.ndim == 3:
            return pl.BlockSpec(arr.shape, lambda i: (0, 0, 0))
        return pl.BlockSpec(arr.shape, lambda i: (0, 0))

    out_pad = pl.pallas_call(
        _mlp_head_kernel,
        out_shape=jax.ShapeDtypeStruct((B_pad, 1), jnp.float32),
        grid=(1,),
        in_specs=[_full_spec(a) for a in head_inputs],
        out_specs=pl.BlockSpec((B_pad, 1), lambda i: (0, 0)),
    )(*head_inputs)

    out = out_pad[:B]
    weight = weight_row[:, :N].T                          # module's (N, 1)
    return out, weight


def _reference(node_feats, smask, seg_ids, num_graphs, params):
    """Pure-JAX re-statement of the original (unfolded) PyTorch math."""
    logit = node_feats @ params["w_aw"] + params["b_aw"]
    weight = jax.nn.sigmoid(logit) * smask
    wh = node_feats * weight
    onehot = (jnp.arange(num_graphs)[:, None] == seg_ids[None, :]).astype(jnp.float32)
    h_g = onehot @ wh

    def fc_bn(x, w, b, bn):
        h = jnp.maximum(x @ w + b, 0.0)
        gamma, beta, mean, var = bn[0], bn[1], bn[2], bn[3]
        return (h - mean) / jnp.sqrt(var + BN_EPS) * gamma + beta

    h1 = fc_bn(h_g, params["w1"], params["b1"], params["bn1"])
    h2 = fc_bn(h1, params["w2"], params["b2"], params["bn2"])
    h3 = fc_bn(h2, params["w3"], params["b3"], params["bn3"])
    out = h3 @ params["wp"] + params["bp"]
    return out, weight


def init_params(key, gnn_out_feats, ffn_hidden_feats):
    ks = jax.random.split(key, 12)
    F, H = gnn_out_feats, ffn_hidden_feats

    def lin(k, fan_in, fan_out):
        scale = 1.0 / jnp.sqrt(fan_in)
        kw, kb = jax.random.split(k)
        w = jax.random.uniform(kw, (fan_in, fan_out), jnp.float32, -scale, scale)
        b = jax.random.uniform(kb, (1, fan_out), jnp.float32, -scale, scale)
        return w, b

    def bn(k, h):
        # rows: [gamma, beta, running_mean, running_var]
        kg, kb, km, kv = jax.random.split(k, 4)
        gamma = 1.0 + 0.1 * jax.random.normal(kg, (h,), jnp.float32)
        beta = 0.1 * jax.random.normal(kb, (h,), jnp.float32)
        mean = 0.1 * jax.random.normal(km, (h,), jnp.float32)
        var = 1.0 + 0.1 * jax.random.uniform(kv, (h,), jnp.float32)
        return jnp.stack([gamma, beta, mean, var], axis=0)

    w_aw, b_aw = lin(ks[0], F, 1)
    w1, b1 = lin(ks[1], F, H)
    w2, b2 = lin(ks[2], H, H)
    w3, b3 = lin(ks[3], H, H)
    wp, bp = lin(ks[4], H, 1)
    return {
        "w_aw": w_aw, "b_aw": b_aw,
        "w1": w1, "b1": b1, "bn1": bn(ks[5], H),
        "w2": w2, "b2": b2, "bn2": bn(ks[6], H),
        "w3": w3, "b3": b3, "bn3": bn(ks[7], H),
        "wp": wp, "bp": bp,
    }


if __name__ == "__main__":
    key = jax.random.PRNGKey(0)
    k_feat, k_mask, k_param, k_feat2, k_mask2 = jax.random.split(key, 5)

    gnn_out_feats = 32     # gnn_rgcn_out_feats
    ffn_hidden = 32        # ffn_hidden_feats
    params = init_params(k_param, gnn_out_feats, ffn_hidden)

    # Case 1: tiny batch (B=2 molecules, 12 atoms), single-core path, f32.
    atoms = (5, 7)
    B = len(atoms)
    N = sum(atoms)
    node_feats = jax.random.normal(k_feat, (N, gnn_out_feats), jnp.float32)
    smask = (jax.random.uniform(k_mask, (N, 1)) > 0.3).astype(jnp.float32)
    seg_ids = jnp.concatenate(
        [jnp.full((n,), i, jnp.int32) for i, n in enumerate(atoms)])

    out, weight = base_gnn_forward(node_feats, smask, seg_ids, B, params,
                                   num_cores=1)
    out, weight = jax.block_until_ready((out, weight))
    ref_out, ref_weight = _reference(node_feats, smask, seg_ids, B, params)
    assert out.shape == (B, 1) and weight.shape == (N, 1)
    assert jnp.allclose(weight, ref_weight, atol=1e-5, rtol=1e-5)
    assert jnp.allclose(out, ref_out, atol=5e-4, rtol=5e-4)

    # Case 2: multi-tile + ragged tail + 2-core split (v7x path; runs serially
    # and stays correct on 1-TC chips), f32.
    atoms2 = (60, 85, 49)
    B2 = len(atoms2)
    N2 = sum(atoms2)
    node_feats2 = jax.random.normal(k_feat2, (N2, gnn_out_feats), jnp.float32)
    smask2 = (jax.random.uniform(k_mask2, (N2, 1)) > 0.3).astype(jnp.float32)
    seg_ids2 = jnp.concatenate(
        [jnp.full((n,), i, jnp.int32) for i, n in enumerate(atoms2)])

    out2, weight2 = base_gnn_forward(node_feats2, smask2, seg_ids2, B2, params,
                                     tile_n=128, num_cores=2)
    out2, weight2 = jax.block_until_ready((out2, weight2))
    ref_out2, ref_weight2 = _reference(node_feats2, smask2, seg_ids2, B2, params)
    assert jnp.allclose(weight2, ref_weight2, atol=1e-5, rtol=1e-5)
    assert jnp.allclose(out2, ref_out2, atol=5e-4, rtol=5e-4)

    # Case 3: bf16 feats stream (halves HBM traffic; f32 accumulation).
    out3, weight3 = base_gnn_forward(
        node_feats2.astype(jnp.bfloat16), smask2, seg_ids2, B2, params,
        tile_n=128, num_cores=2)
    out3, weight3 = jax.block_until_ready((out3, weight3))
    ref_out3, ref_weight3 = _reference(
        node_feats2.astype(jnp.bfloat16).astype(jnp.float32),
        smask2, seg_ids2, B2, params)
    assert jnp.allclose(weight3, ref_weight3, atol=1e-4, rtol=1e-4)
    assert jnp.allclose(out3, ref_out3, atol=5e-2, rtol=5e-2)

    print("KERNEL_OK")
</pallas_src>

<mosaic_0001>
module attributes {stable_mosaic.version = 11 : i64} {
  func.func @_weight_and_sum_kernel(%arg0: i32, %arg1: i32, %arg2: memref<128x32xf32, #tpu.memory_space<vmem>>, %arg3: memref<2x128xf32, #tpu.memory_space<vmem>>, %arg4: memref<32x1xf32, #tpu.memory_space<vmem>>, %arg5: memref<1x1xf32, #tpu.memory_space<vmem>>, %arg6: memref<1x8x32xf32, #tpu.memory_space<vmem>>, %arg7: memref<1x128xf32, #tpu.memory_space<vmem>>, %arg8: memref<8x32xf32, #tpu.memory_space<vmem>>) attributes {dimension_semantics = [#tpu.dimension_semantics<parallel>, #tpu.dimension_semantics<arbitrary>], iteration_bounds = array<i64: 1, 1>, scalar_prefetch = 0 : i64, scratch_operands = 1 : i64, tpu.core_type = #tpu.core_type<tc>, window_params = [{transform_indices = @transform_0, window_bounds = array<i64: 128, 32>}, {transform_indices = @transform_1, window_bounds = array<i64: 2, 128>}, {pipeline_mode = #tpu.pipeline_mode<synchronous>, transform_indices = @transform_2, window_bounds = array<i64: 32, 1>}, {pipeline_mode = #tpu.pipeline_mode<synchronous>, transform_indices = @transform_3, window_bounds = array<i64: 1, 1>}, {transform_indices = @transform_4, window_bounds = array<i64: 1, 8, 32>}, {transform_indices = @transform_5, window_bounds = array<i64: 1, 128>}]} {
    %c0_i32 = arith.constant 0 : i32
    %0 = arith.cmpi eq, %arg1, %c0_i32 : i32
    %1 = arith.extui %0 : i1 to i32
    %c0_i32_0 = arith.constant 0 : i32
    %2 = arith.cmpi ne, %1, %c0_i32_0 : i32
    scf.if %2 {
      %cst_22 = arith.constant 0.000000e+00 : f32
      %56 = vector.broadcast %cst_22 : f32 to vector<8x32xf32>
      %c0_23 = arith.constant 0 : index
      %c0_24 = arith.constant 0 : index
      %57 = vector.load %arg8[%c0_23, %c0_24] : memref<8x32xf32, #tpu.memory_space<vmem>>, vector<8x32xf32>
      tpu.vector_store %arg8[%c0_23, %c0_24], %56 {strides = array<i32>} : memref<8x32xf32, #tpu.memory_space<vmem>>, vector<8x32xf32>,
    } else {
    }
    %c0 = arith.constant 0 : index
    %c0_1 = arith.constant 0 : index
    %3 = vector.load %arg2[%c0, %c0_1] : memref<128x32xf32, #tpu.memory_space<vmem>>, vector<128x32xf32>
    %c1_i32 = arith.constant 1 : i32
    %4 = arith.muli %arg0, %c1_i32 : i32
    %5 = arith.addi %4, %arg1 : i32
    %c128_i32 = arith.constant 128 : i32
    %6 = arith.muli %5, %c128_i32 : i32
    %7 = tpu.iota {dimensions = array<i32: 0>} : vector<128x1xi32>
    %8 = vector.broadcast %6 : i32 to vector<128x1xi32>
    %9 = arith.addi %8, %7 : vector<128x1xi32>
    %c12_i32 = arith.constant 12 : i32
    %10 = vector.broadcast %c12_i32 : i32 to vector<128x1xi32>
    %11 = arith.cmpi slt, %9, %10 : vector<128x1xi32>
    %cst = arith.constant 0.000000e+00 : f32
    %12 = vector.broadcast %cst : f32 to vector<128x32xf32>
    %13 = vector.shape_cast %11 : vector<128x1xi1> to vector<128x1xi1>
    %14 = vector.broadcast %13 : vector<128x1xi1> to vector<128x32xi1>
    %15 = arith.select %14, %3, %12 : vector<128x32xi1>, vector<128x32xf32>
    %16 = tpu.transpose %15, [1, 0] : vector<128x32xf32> -> vector<32x128xf32>
    %c0_2 = arith.constant 0 : index
    %c0_3 = arith.constant 0 : index
    %17 = vector.load %arg3[%c0_2, %c0_3] : memref<2x128xf32, #tpu.memory_space<vmem>>, vector<1x128xf32>
    %c1 = arith.constant 1 : index
    %c0_4 = arith.constant 0 : index
    %18 = vector.load %arg3[%c1, %c0_4] : memref<2x128xf32, #tpu.memory_space<vmem>>, vector<1x128xf32>
    %19 = arith.fptosi %18 : vector<1x128xf32> to vector<1x128xi32>
    %c0_5 = arith.constant 0 : index
    %c0_6 = arith.constant 0 : index
    %20 = vector.load %arg4[%c0_5, %c0_6] : memref<32x1xf32, #tpu.memory_space<vmem>>, vector<32x1xf32>
    %21 = vector.broadcast %20 : vector<32x1xf32> to vector<32x128xf32>
    %22 = arith.mulf %16, %21 : vector<32x128xf32>
    %cst_7 = arith.constant dense<0.000000e+00> : vector<128xf32>
    %23 = vector.multi_reduction <add>, %22, %cst_7 [0] : vector<32x128xf32> to vector<128xf32>
    %24 = vector.shape_cast %23 : vector<128xf32> to vector<1x128xf32>
    %c0_8 = arith.constant 0 : index
    %c0_9 = arith.constant 0 : index
    %25 = vector.load %arg5[%c0_8, %c0_9] : memref<1x1xf32, #tpu.memory_space<vmem>>, vector<1x1xf32>
    %26 = vector.broadcast %25 : vector<1x1xf32> to vector<1x128xf32>
    %27 = arith.addf %24, %26 : vector<1x128xf32>
    %28 = tpu.iota {dimensions = array<i32: 1>} : vector<1x128xi32>
    %29 = vector.broadcast %6 : i32 to vector<1x128xi32>
    %30 = arith.addi %29, %28 : vector<1x128xi32>
    %c12_i32_10 = arith.constant 12 : i32
    %31 = vector.broadcast %c12_i32_10 : i32 to vector<1x128xi32>
    %32 = arith.cmpi slt, %30, %31 : vector<1x128xi32>
    %33 = arith.negf %27 : vector<1x128xf32>
    %34 = math.exp %33 : vector<1x128xf32>
    %cst_11 = arith.constant 1.000000e+00 : f32
    %35 = vector.broadcast %cst_11 : f32 to vector<1x128xf32>
    %36 = arith.addf %35, %34 : vector<1x128xf32>
    %37 = arith.divf %35, %36 : vector<1x128xf32>
    %38 = arith.mulf %37, %17 : vector<1x128xf32>
    %cst_12 = arith.constant 0.000000e+00 : f32
    %39 = vector.broadcast %cst_12 : f32 to vector<1x128xf32>
    %40 = arith.select %32, %38, %39 : vector<1x128xi1>, vector<1x128xf32>
    %c0_13 = arith.constant 0 : index
    %c0_14 = arith.constant 0 : index
    %41 = vector.load %arg7[%c0_13, %c0_14] : memref<1x128xf32, #tpu.memory_space<vmem>>, vector<1x128xf32>
    tpu.vector_store %arg7[%c0_13, %c0_14], %40 {strides = array<i32>} : memref<1x128xf32, #tpu.memory_space<vmem>>, vector<1x128xf32>,
    %42 = tpu.iota {dimensions = array<i32: 0>} : vector<8x128xi32>
    %43 = vector.broadcast %19 : vector<1x128xi32> to vector<8x128xi32>
    %44 = arith.cmpi eq, %42, %43 : vector<8x128xi32>
    %45 = arith.extui %44 : vector<8x128xi1> to vector<8x128xi32>
    %46 = arith.sitofp %45 : vector<8x128xi32> to vector<8x128xf32>
    %47 = vector.broadcast %40 : vector<1x128xf32> to vector<8x128xf32>
    %48 = arith.mulf %46, %47 : vector<8x128xf32>
    %c0_15 = arith.constant 0 : index
    %c0_16 = arith.constant 0 : index
    %49 = vector.load %arg8[%c0_15, %c0_16] : memref<8x32xf32, #tpu.memory_space<vmem>>, vector<8x32xf32>
    %cst_17 = arith.constant dense<0.000000e+00> : vector<8x32xf32>
    %50 = tpu.matmul %48, %16, %cst_17 {dimension_numbers = #tpu.dot_dimension_numbers<[1], [1], [0], [0], [0, 0, 1, 0], [], []>} : vector<8x128xf32>, vector<32x128xf32>, vector<8x32xf32> -> vector<8x32xf32>
    %51 = arith.addf %49, %50 : vector<8x32xf32>
    %c0_18 = arith.constant 0 : index
    %c0_19 = arith.constant 0 : index
    %52 = vector.load %arg8[%c0_18, %c0_19] : memref<8x32xf32, #tpu.memory_space<vmem>>, vector<8x32xf32>
    tpu.vector_store %arg8[%c0_18, %c0_19], %51 {strides = array<i32>} : memref<8x32xf32, #tpu.memory_space<vmem>>, vector<8x32xf32>,
    %c0_i32_20 = arith.constant 0 : i32
    %53 = arith.cmpi eq, %arg1, %c0_i32_20 : i32
    %54 = arith.extui %53 : i1 to i32
    %c0_i32_21 = arith.constant 0 : i32
    %55 = arith.cmpi ne, %54, %c0_i32_21 : i32
    scf.if %55 {
      %c0_22 = arith.constant 0 : index
      %c0_23 = arith.constant 0 : index
      %56 = vector.load %arg8[%c0_22, %c0_23] : memref<8x32xf32, #tpu.memory_space<vmem>>, vector<8x32xf32>
      %c0_24 = arith.constant 0 : index
      %c0_25 = arith.constant 0 : index
      %c0_26 = arith.constant 0 : index
      %57 = vector.load %arg6[%c0_24, %c0_25, %c0_26] : memref<1x8x32xf32, #tpu.memory_space<vmem>>, vector<1x8x32xf32>
      %58 = vector.shape_cast %57 : vector<1x8x32xf32> to vector<8x32xf32>
      %59 = vector.shape_cast %56 : vector<8x32xf32> to vector<1x8x32xf32>
      tpu.vector_store %arg6[%c0_24, %c0_25, %c0_26], %59 {strides = array<i32>} : memref<1x8x32xf32, #tpu.memory_space<vmem>>, vector<1x8x32xf32>,
    } else {
    }
    return
  }
  func.func @transform_0(%arg0: i32, %arg1: i32) -> (i32, i32) {
    %c1_i32 = arith.constant 1 : i32
    %0 = arith.muli %arg0, %c1_i32 : i32
    %1 = arith.addi %0, %arg1 : i32
    %c0_i32 = arith.constant 0 : i32
    %2 = arith.minsi %1, %c0_i32 : i32
    %c0_i32_0 = arith.constant 0 : i32
    %c0_i32_1 = arith.constant 0 : i32
    return %2, %c0_i32_0 : i32, i32
  }
  func.func @transform_1(%arg0: i32, %arg1: i32) -> (i32, i32) {
    %c1_i32 = arith.constant 1 : i32
    %0 = arith.muli %arg0, %c1_i32 : i32
    %1 = arith.addi %0, %arg1 : i32
    %c0_i32 = arith.constant 0 : i32
    %c0_i32_0 = arith.constant 0 : i32
    return %c0_i32, %1 : i32, i32
  }
  func.func @transform_2(%arg0: i32, %arg1: i32) -> (i32, i32) {
    %c0_i32 = arith.constant 0 : i32
    %c0_i32_0 = arith.constant 0 : i32
    %c0_i32_1 = arith.constant 0 : i32
    return %c0_i32, %c0_i32_0 : i32, i32
  }
  func.func @transform_3(%arg0: i32, %arg1: i32) -> (i32, i32) {
    %c0_i32 = arith.constant 0 : i32
    %c0_i32_0 = arith.constant 0 : i32
    %c0_i32_1 = arith.constant 0 : i32
    return %c0_i32, %c0_i32_0 : i32, i32
  }
  func.func @transform_4(%arg0: i32, %arg1: i32) -> (i32, i32, i32) {
    %c0_i32 = arith.constant 0 : i32
    %c0_i32_0 = arith.constant 0 : i32
    %c0_i32_1 = arith.constant 0 : i32
    return %arg0, %c0_i32, %c0_i32_0 : i32, i32, i32
  }
  func.func @transform_5(%arg0: i32, %arg1: i32) -> (i32, i32) {
    %c1_i32 = arith.constant 1 : i32
    %0 = arith.muli %arg0, %c1_i32 : i32
    %1 = arith.addi %0, %arg1 : i32
    %c0_i32 = arith.constant 0 : i32
    %c0_i32_0 = arith.constant 0 : i32
    return %c0_i32, %1 : i32, i32
  }
}

</mosaic_0001>

<bundles_post_ra>
// kernel: tpu_custom_call.1
= control target key start
LH: loop header
LB: loop body
LE: loop exit
PB: predicated region body
PF: predicated region fallthrough
CT: control target
= control target key end

     0   :  { %s611_s0 = inlined_call_operand.vmem [shape: f32[12,32], index: 0, kind: input, shape index: {}]   ;;  %s612_s1 = inlined_call_operand.vmem [shape: f32[2,128], index: 1, kind: input, shape index: {}]   ;;  %s613_s2 = inlined_call_operand.vmem [shape: f32[32,1], index: 2, kind: input, shape index: {}]   ;;  %s614_s3 = inlined_call_operand.<no memory space> [shape: f32[1,1], index: 3, kind: input, shape index: {}]   ;;  %s615_s4 = inlined_call_operand.hbm [shape: f32[1,8,32], index: 4, kind: output, shape index: {0}]   ;;  %s616_s5 = inlined_call_operand.hbm [shape: f32[1,128], index: 5, kind: output, shape index: {1}]  }
   0x1   :  { %v11_v0 = vstv %s614_s3 }
   0x2   :  { %12 = vst [vmem:[#allocation3] sm:$0x1] %v11_v0 }
   0x3   :  { %13 = vsyncpa [#allocation5], 0  ;;  %v242_v1 = vld [vmem:[%s613_s2 + $0x10] sm:$0xff]  ;;  %v240_v2 = vld [vmem:[%s613_s2] sm:$0xff]  ;;  %v521_v3 = vmov 0  }
   0x4   :  { %468 = vset.pattern.permute.xlu1 %v521_v3  ;;  %467 = vset.pattern.permute.xlu0 %v521_v3 }
   0x5   :  { %256 = vperm.xlu1 %468, %v242_v1   ;;  %246 = vperm.xlu0 %467, %v240_v2  }
   0x6   :  { %14 = vsyncpa [#allocation7], 0  ;;  %v243_v4 = vld [vmem:[%s613_s2 + $0x18] sm:$0xff]  ;;  %v241_v5 = vld [vmem:[%s613_s2 + $0x8] sm:$0xff]  ;;  %v107_v7 = vlaneseq  ;;  %v522_v13 = vmov 0.0|0.0   ;;  %vm523_vm1 = vmmov 0  }
   0x7   :  { %v89_v10 = vld [vmem:[%s611_s0] sm:$0xff]  ;;  %v90_v11 = vld [vmem:[%s611_s0 + $0x8] sm:$0xff]  ;;  %453 = vmatprep.subr.bf16.mxu0 %v522_v13  ;;  %v524_v14 = vmov 0.0   ;;  %vm87_vm2 = vcmask 261120   ;;  %s525_s8 = smov [#allocation6]  }
   0x8   :  { %v108_v8 = vshrl.u32 %v107_v7, 7  ;;  %450 = vmatprep.mubr.msk.f32.mxu0 %vm523_vm1, %v524_v14  ;;  %88 = vst.msk [vmem:[#allocation2] sm:$0xff] %vm87_vm2, %v524_v14  ;;  %v238_v43 = vld [vmem:[%s612_s1 + $0x1] sm:$0x1]  ;;  %v289_v49 = vand.u32 127, %v107_v7  ;;  %s411_s9 = sshll.u32 %s525_s8, 4  ;;  %s412_s9 = int_to_ptr.vmem [resolvable:$true] %s411_s9 }
   0x9   :  { %261 = vperm.xlu1 %468, %v243_v4   ;;  %251 = vperm.xlu0 %467, %v241_v5   ;;  %v277_v6 = vld [vmem:[#allocation3] sm:$0x1]  ;;  %v459_v46 = vtrunc.f32 %v238_v43  ;;  %v237_v50 = vld [vmem:[%s612_s1] sm:$0x1]  ;;  %s473_s10 = scalar_lea.vmem %s412_s9, 16  ;;  %s477_s11 = scalar_lea.vmem %s412_s9, 32 }
   0xa   :  { %v109_v9 = vadd.s32 8, %v108_v8  ;;  %v285_v35 = vsub.s32 0, %v108_v8  ;;  %vm291_vm4 = vcmp.lt.s32.totalorder %v289_v49, 12  ;;  %p474_p0 = scmp.ne.s32.totalorder %s412_s9, %s473_s10  ;;  %p478_p1 = scmp.lt.s32.totalorder %s412_s9, %s412_s9 }
   0xb   :  { %v460_v47 = vcvt.f32.s32 %v459_v46  ;;  %p479_p2 = scmp.lt.s32.totalorder %s477_s11, %s473_s10 }
   0xc   :  { %vm142_vm0 = vcmp.lt.s32.totalorder %v109_v9, 12 }
   0xd   :  { %280 = vperm.xlu0 %467, %v277_v6   ;;  %v190_v12 = vsel %vm142_vm0, %v90_v11, 0.0  ;;  %v304_v48 = vrot.slane %v460_v47, %v285_v35  ;;  %p480_p3 = por %p479_p2, %p478_p1 }
   0xf   :  { %vm305_vm3 = vcmp.eq.s32.totalorder %v108_v8, %v304_v48  ;;  %p481_p4 = pnand %p480_p3, %p474_p0 }
  0x10   :  { %v436_v53 = vsel %vm305_vm3, 1.0, %v524_v14 }
  0x32   :  { %205 = vxpose.xlu1.b32.start [1/2] (short) (narrow) %v89_v10, 32 }
  0x36   :  { %206 = vxpose.xlu1.b32.end [2/2] (short) (narrow) %v190_v12, 32 }
  0x84   :  { %v257_v15 = vpop.permute.xlu1 %256  ;;  %v247_v17 = vpop.permute.xlu0 %246 }
  0x88   :  { %v262_v16 = vpop.permute.xlu1 %261  ;;  %v252_v21 = vpop.permute.xlu0 %251 }
  0x8c   :  { %v281_v37 = vpop.permute.xlu0 %280 }
  0x8d   :  { %v286_v39 = vrot.slane %v281_v37, %v285_v35 }
  0xb2   :  { %v221_v18 = vpop.trf.xlu1 }
  0xb3   :  { %v264_v24 = vmul.f32 %v247_v17, %v221_v18 }
  0xb6   :  { %v222_v19 = vpop.trf.xlu1 }
  0xb7   :  { %v454_v20 = vpack.c.bf16 %v222_v19, %v221_v18  ;;  %v265_v22 = vmul.f32 %v252_v21, %v222_v19 }
  0xb9   :  { %455 = vmatpush3.bf16.xpose.msra.mxu0 %v454_v20  ;;  %v268_v26 = vadd.f32 %v265_v22, %v264_v24 }
  0xba   :  { %v223_v23 = vpop.trf.xlu1  ;;  %456 = vmatprep.subr.bf16.mxu0 %v522_v13 }
  0xbb   :  { %v266_v25 = vmul.f32 %v257_v15, %v223_v23 }
  0xbd   :  { %v269_v28 = vadd.f32 %v268_v26, %v266_v25 }
  0xbe   :  { %v224_v27 = vpop.trf.xlu1 }
  0xbf   :  { %v267_v29 = vmul.f32 %v262_v16, %v224_v27  ;;  %v457_v30 = vpack.c.bf16 %v224_v27, %v223_v23 }
  0xc1   :  { %v270_v31 = vadd.f32 %v269_v28, %v267_v29  ;;  %458 = vmatpush3.bf16.xpose.msra.mxu0 %v457_v30 }
  0xc3   :  { %v271_v32 = vrot.slane %v270_v31, 4 }
  0xc5   :  { %v272_v33 = vadd.f32 %v271_v32, %v270_v31 }
  0xc7   :  { %v273_v34 = vrot.slane %v272_v33, 2 }
  0xc9   :  { %v274_v36 = vadd.f32 %v273_v34, %v272_v33 }
  0xcb   :  { %v275_v38 = vrot.slane %v274_v36, 1 }
  0xcd   :  { %v276_v40 = vadd.f32 %v275_v38, %v274_v36 }
  0xcf   :  { %v287_v41 = vadd.f32 %v286_v39, %v276_v40 }
  0xd1   :  { %v435_v42 = vmul.f32 -1.442695, %v287_v41 }
  0xd3   :  { %469 = vpow2.f32 %v435_v42 }
  0xdd   :  { %v470_v44 = vpop.eup %469 }
  0xde   :  { %v295_v45 = vadd.f32 1.0, %v470_v44 }
  0xe0   :  { %471 = vrcp.f32 %v295_v45 }
  0xea   :  { %v472_v51 = vpop.eup %471 }
  0xeb   :  { %v298_v52 = vmul.f32 %v472_v51, %v237_v50 }
  0xed   :  { %v299_v54 = vsel %vm291_vm4, %v298_v52, 0.0 }
  0xee   :  { %v311_v55 = vrot.slane %v299_v54, %v285_v35  ;;  %300 = vst [vmem:[#allocation6] sm:$0x1] %v299_v54 }
  0xf0   :  { %v312_v56 = vmul.f32 %v436_v53, %v311_v55 }
  0xf2   :  { %451 = vmatmul.mubr.f32.vlgmr.msra.gmra.mrb[0].mxu0 %v312_v56 }
  0xf3   :  { %484 = shalt.err (!%p481_p4)
}
  0xf4   :  { %s485_s13 = scalar_lea.hbm %s616_s5, 16 }
  0xf5   :  { %p486_p5 = scmp.ne.s32.totalorder %s616_s5, %s485_s13  ;;  %p489_p6 = scmp.lt.u32.totalorder %s485_s13, %s616_s5 }
  0xf7   :  { %p491_p7 = pnand %p489_p6, %p486_p5 }
  0xf9   :  { %494 = shalt.err (!%p491_p7)
}
  0xfa   :  { %414 = dma.vmem_to_hbm [thread:$0]  %s412_s9, 16, %s616_s5, [#allocation7]   ;;  %v313_v57 = vld [vmem:[#allocation2] sm:$0xff] }
  0xfb   :  { %s526_s20 = smov [#allocation4]  }
  0xfc   :  { %s398_s21 = sshll.u32 %s526_s20, 4  ;;  %s399_s21 = int_to_ptr.vmem [resolvable:$true] %s398_s21 }
  0xfd   :  { %s495_s22 = scalar_lea.vmem %s399_s21, 128  ;;  %p500_p9 = scmp.lt.s32.totalorder %s399_s21, %s399_s21 }
  0xfe   :  { %p496_p8 = scmp.ne.s32.totalorder %s399_s21, %s495_s22  ;;  %p501_p10 = scmp.lt.s32.totalorder %s495_s22, %s495_s22 }
 0x100   :  { %p502_p11 = por %p501_p10, %p500_p9 }
 0x102   :  { %p503_p12 = pnand %p502_p11, %p496_p8 }
 0x1c5   :  { %v380_v58 = vpop.f32.mrb[0].mxu0 }
 0x1c6   :  { %v384_v59 = vadd.f32 %v380_v58, %v313_v57  ;;  %v452_v60 = vpop.f32.mrb[1].mxu0 }
 0x1c8   :  { %386 = vst.msk [vmem:[#allocation2] sm:$0xff] %vm87_vm2, %v384_v59 }
 0x1cf   :  { %v390_v61 = vld [vmem:[#allocation2] sm:$0xff] }
 0x1d0   :  { %391 = vst.msk [vmem:[#allocation4] sm:$0xff] %vm87_vm2, %v390_v61 }
 0x1d1   :  { %506 = shalt.err (!%p503_p12)
}
 0x1d2   :  { %s507_s24 = scalar_lea.hbm %s615_s4, 128 }
 0x1d3   :  { %p508_p13 = scmp.ne.s32.totalorder %s615_s4, %s507_s24  ;;  %p511_p0 = scmp.lt.u32.totalorder %s507_s24, %s615_s4 }
 0x1d5   :  { %p513_p1 = pnand %p511_p0, %p508_p13 }
 0x1d7   :  { %516 = shalt.err (!%p513_p1)
}
 0x1d8   :  { %401 = dma.vmem_to_hbm [thread:$0]  %s399_s21, 128, %s615_s4, [#allocation5]  }
 0x1d9   :  { %517 = dma.done.wait [#allocation5], 128  }
 0x1da   :  { %518 = vsyncadd [#allocation5], 4294967168 }
 0x1db   :  { %519 = dma.done.wait [#allocation7], 16  }
 0x1dc   :  { %520 = vsyncadd [#allocation7], 4294967280 }
 0x1dd   :  { %421 = vsyncpa [#allocation5], 1 }
 0x1de   :  { %422 = vsyncpa [#allocation7], 1 }

</bundles_post_ra>
